<compile_context>
chip_gen: v6e
topology: v6e:2x2x1
jax: 0.10.0
libtpu: 0.0.40
codegen_flags: <defaults>
</compile_context>

<pallas_src>
import functools

import jax
import jax.numpy as jnp
from jax.experimental import pallas as pl
from jax.experimental.pallas import tpu as pltpu


def _round_up(n, m):
    return ((n + m - 1) // m) * m


def _layernorm_rows(x, gamma, beta, *, eps, h_true):
    """Torch-style LayerNorm over the last dim (unbiased std, eps added to std).

    Statistics use only the true hidden width h_true; padded lanes are masked
    out of both mean and variance, so the result does not depend on pad data.
    """
    hp = x.shape[-1]
    if h_true == hp:
        mean = jnp.mean(x, axis=-1, keepdims=True)
        diff = x - mean
    else:
        lane = jax.lax.broadcasted_iota(jnp.int32, x.shape, dimension=1)
        valid = lane < h_true
        xm = jnp.where(valid, x, 0.0)
        mean = jnp.sum(xm, axis=-1, keepdims=True) * (1.0 / h_true)
        diff = jnp.where(valid, x - mean, 0.0)
    denom = max(h_true - 1, 1)                       # Bessel; guard h_true == 1
    var = jnp.sum(diff * diff, axis=-1, keepdims=True) * (1.0 / denom)
    # Exact reciprocal: runs on the EUP on a (tm, 1) column -> essentially free.
    inv = pl.reciprocal(jnp.sqrt(var) + eps, approx=False)
    return gamma * diff * inv + beta


def _fused_kernel(x_ref, gb_ref, w_ref, o_ref, *, eps, h_true):
    """Weight fully resident in VMEM; one grid axis over row tiles."""
    x = x_ref[...].astype(jnp.float32)               # LN math in f32 (v5e VPU)
    normed = _layernorm_rows(x, gb_ref[0:1, :], gb_ref[1:2, :],
                             eps=eps, h_true=h_true)
    y = jnp.dot(normed.astype(w_ref.dtype), w_ref[...],
                preferred_element_type=jnp.float32)
    # dropout (eval mode => identity) + fused bias + residual epilogue.
    o_ref[...] = (x + y + gb_ref[2:3, :]).astype(o_ref.dtype)


def _ntiled_kernel(x_full_ref, gb_ref, w_ref, b_ref, x_res_ref, o_ref,
                   normed_ref, *, eps, h_true):
    """Large-H path: stream (Hp, tn) weight column slabs.

    LayerNorm is computed once per row tile (at j == 0) into a bf16 VMEM
    scratch and reused across the N axis; each column step adds the matching
    residual / bias slice.
    """
    @pl.when(pl.program_id(1) == 0)
    def _():
        x = x_full_ref[...].astype(jnp.float32)
        normed = _layernorm_rows(x, gb_ref[0:1, :], gb_ref[1:2, :],
                                 eps=eps, h_true=h_true)
        normed_ref[...] = normed.astype(normed_ref.dtype)

    y = jnp.dot(normed_ref[...], w_ref[...], preferred_element_type=jnp.float32)
    o_ref[...] = (x_res_ref[...].astype(jnp.float32) + y
                  + b_ref[...]).astype(o_ref.dtype)


def sublayer_connection(x, gamma, beta, w, b, *, eps=1e-6,
                        mxu_dtype=jnp.bfloat16):
    """x: [B, S, H]; gamma/beta/b: [H]; w: [H, H] (applied as normed @ w + b)."""
    B, S, H = x.shape
    rows = B * S
    LANE = 128
    in_item = jnp.dtype(x.dtype).itemsize
    w_item = jnp.dtype(mxu_dtype).itemsize
    sub = max(8, 32 // in_item)                      # sublane multiple for dtype

    # Pad hidden only if it is not already lane-dense.
    Hp = _round_up(max(H, LANE), LANE)

    # ---- adaptive row tile: target ~1-2 MiB x tiles, fill the MXU M dim ----
    if H <= 256:
        tm = 1024
    elif H <= 1024:
        tm = 512
    else:
        tm = 256
    tm = max(min(tm, _round_up(rows, sub)), sub)
    # Give both v7x TensorCores work: >= 2 steps on the parallel row axis.
    if rows > sub and pl.cdiv(rows, tm) < 2:
        tm = _round_up(pl.cdiv(rows, 2), sub)
    n_row = pl.cdiv(rows, tm)                        # no row padding (tail masked)

    # ---- per-chip VMEM budget (~100 MiB on v5e/v6e, ~50 MiB on v7x) ----
    try:
        cap = int(pltpu.get_tpu_info().vmem_capacity_bytes)
    except Exception:
        cap = 64 * 1024 * 1024                       # conservative (v7x) fallback
    usable = int(cap * 0.78)

    def fused_est(tm_):
        return (2 * tm_ * Hp * in_item               # x tiles (double-buffered)
                + 2 * tm_ * Hp * in_item             # out tiles (double-buffered)
                + Hp * Hp * w_item                   # resident weight (1 buffer)
                + 8 * Hp * 4                         # gamma/beta/bias slab
                + 4 * tm_ * Hp * 4)                  # in-kernel f32 working set

    use_fused = fused_est(tm) <= usable

    # ---- host-side parameter packing (tiny, one-off) ----
    x2 = x.reshape(rows, H)
    if Hp != H:
        x2 = jnp.pad(x2, ((0, 0), (0, Hp - H)))
    gb = jnp.zeros((8, Hp), jnp.float32)
    gb = gb.at[0, :H].set(gamma.astype(jnp.float32))
    gb = gb.at[1, :H].set(beta.astype(jnp.float32))
    gb = gb.at[2, :H].set(b.astype(jnp.float32))
    w2 = w.astype(mxu_dtype)
    if Hp != H:
        w2 = jnp.pad(w2, ((0, Hp - H), (0, Hp - H)))

    def run(single_buffer_invariants):
        if single_buffer_invariants:
            inv_spec = lambda shape, imap: pl.BlockSpec(
                shape, imap, pipeline_mode=pl.Buffered(1))
        else:
            inv_spec = lambda shape, imap: pl.BlockSpec(shape, imap)

        if use_fused:
            vmem_limit = int(min(max(fused_est(tm) + (8 << 20), 32 << 20),
                                 usable))
            return pl.pallas_call(
                functools.partial(_fused_kernel, eps=eps, h_true=H),
                out_shape=jax.ShapeDtypeStruct((rows, Hp), x.dtype),
                grid_spec=pltpu.PrefetchScalarGridSpec(
                    num_scalar_prefetch=0,
                    grid=(n_row,),
                    in_specs=[
                        pl.BlockSpec((tm, Hp), lambda i: (i, 0)),   # x rows
                        inv_spec((8, Hp), lambda i: (0, 0)),        # γ/β/bias
                        inv_spec((Hp, Hp), lambda i: (0, 0)),       # weight
                    ],
                    out_specs=pl.BlockSpec((tm, Hp), lambda i: (i, 0)),
                ),
                compiler_params=pltpu.CompilerParams(
                    dimension_semantics=("parallel",),
                    vmem_limit_bytes=vmem_limit,
                ),
            )(x2, gb, w2)

        # -------- N-tiled path: weight streamed in (Hp, tn) slabs --------
        tm_n = min(tm, 256)
        nr = pl.cdiv(rows, tm_n)

        def ntiled_est(tn_):
            return (2 * tm_n * Hp * in_item          # x full-width (LN source)
                    + 2 * tm_n * tn_ * in_item       # x residual slices
                    + 2 * tm_n * tn_ * in_item       # out tiles
                    + 2 * Hp * tn_ * w_item          # streamed weight slabs
                    + 2 * tn_ * 4 + 8 * Hp * 4       # bias slices + γ/β slab
                    + tm_n * Hp * 2                  # normed scratch (bf16)
                    + 4 * tm_n * Hp * 4)             # f32 working set at j == 0

        tn = min(Hp, 2048)
        while tn > 256 and ntiled_est(tn) > usable:
            tn -= 256
        tn = max(tn, 256)
        n_col = pl.cdiv(Hp, tn)
        bias2 = gb[2:3, :]
        vmem_limit = int(min(max(ntiled_est(tn) + (8 << 20), 32 << 20), usable))
        return pl.pallas_call(
            functools.partial(_ntiled_kernel, eps=eps, h_true=H),
            out_shape=jax.ShapeDtypeStruct((rows, Hp), x.dtype),
            grid_spec=pltpu.PrefetchScalarGridSpec(
                num_scalar_prefetch=0,
                grid=(nr, n_col),
                in_specs=[
                    pl.BlockSpec((tm_n, Hp), lambda i, j: (i, 0)),  # x full row
                    inv_spec((8, Hp), lambda i, j: (0, 0)),         # γ/β slab
                    pl.BlockSpec((Hp, tn), lambda i, j: (0, j)),    # weight slab
                    pl.BlockSpec((1, tn), lambda i, j: (0, j)),     # bias slice
                    pl.BlockSpec((tm_n, tn), lambda i, j: (i, j)),  # residual
                ],
                out_specs=pl.BlockSpec((tm_n, tn), lambda i, j: (i, j)),
                scratch_shapes=[pltpu.VMEM((tm_n, Hp), mxu_dtype)],
            ),
            compiler_params=pltpu.CompilerParams(
                dimension_semantics=("parallel", "arbitrary"),
                vmem_limit_bytes=vmem_limit,
            ),
        )(x2, gb, w2, bias2, x2)

    try:
        out = run(True)
    except Exception:
        # pipeline_mode / Buffered(1) not supported by this jax build: fall
        # back to default double-buffering (correct, slightly more VMEM).
        out = run(False)

    out2 = out if Hp == H else out[:, :H]
    return out2.reshape(B, S, H)


def _reference(x, gamma, beta, w, b, eps=1e-6):
    x32 = x.astype(jnp.float32)
    mean = jnp.mean(x32, axis=-1, keepdims=True)
    diff = x32 - mean
    var_unbiased = jnp.sum(diff * diff, axis=-1, keepdims=True) / (x.shape[-1] - 1)
    std = jnp.sqrt(var_unbiased)
    normed = gamma * diff / (std + eps) + beta
    y = normed @ w + b
    return (x32 + y).astype(x.dtype)


if __name__ == "__main__":
    B, S, H = 2, 8, 32
    key = jax.random.PRNGKey(0)
    kx, kw, kb = jax.random.split(key, 3)

    x = jax.random.normal(kx, (B, S, H), dtype=jnp.float32)

    # LayerNorm params, initialized as in the module: ones / zeros.
    gamma = jnp.ones((H,), jnp.float32)
    beta = jnp.zeros((H,), jnp.float32)

    # Deterministic synthetic Linear sublayer params.
    w = jax.random.normal(kw, (H, H), dtype=jnp.float32) * 0.05
    b = jax.random.normal(kb, (H,), dtype=jnp.float32) * 0.05

    out = sublayer_connection(x, gamma, beta, w, b)
    out = jax.block_until_ready(out)

    ref = _reference(x, gamma, beta, w, b)
    assert out.shape == (B, S, H)
    # Exact reciprocal now; remaining tolerance covers the bf16 MXU inputs
    # (f32 accumulation) of the Linear sublayer.
    assert jnp.allclose(out, ref, atol=1e-2, rtol=1e-2), "mismatch vs reference"

    print("KERNEL_OK")
</pallas_src>

<mosaic_0001>
module attributes {stable_mosaic.version = 11 : i64} {
  func.func @_fused_kernel(%arg0: i32, %arg1: memref<8x128xf32, #tpu.memory_space<vmem>>, %arg2: memref<8x128xf32, #tpu.memory_space<vmem>>, %arg3: memref<128x128xbf16, #tpu.memory_space<vmem>>, %arg4: memref<8x128xf32, #tpu.memory_space<vmem>>) attributes {dimension_semantics = [#tpu.dimension_semantics<parallel>], iteration_bounds = array<i64: 2>, scalar_prefetch = 0 : i64, scratch_operands = 0 : i64, tpu.core_type = #tpu.core_type<tc>, window_params = [{transform_indices = @transform_0, window_bounds = array<i64: 8, 128>}, {pipeline_mode = #tpu.pipeline_mode<synchronous>, transform_indices = @transform_1, window_bounds = array<i64: 8, 128>}, {pipeline_mode = #tpu.pipeline_mode<synchronous>, transform_indices = @transform_2, window_bounds = array<i64: 128, 128>}, {transform_indices = @transform_3, window_bounds = array<i64: 8, 128>}]} {
    %c0 = arith.constant 0 : index
    %c0_0 = arith.constant 0 : index
    %0 = vector.load %arg1[%c0, %c0_0] : memref<8x128xf32, #tpu.memory_space<vmem>>, vector<8x128xf32>
    %c0_1 = arith.constant 0 : index
    %c0_2 = arith.constant 0 : index
    %1 = vector.load %arg2[%c0_1, %c0_2] : memref<8x128xf32, #tpu.memory_space<vmem>>, vector<1x128xf32>
    %c1 = arith.constant 1 : index
    %c0_3 = arith.constant 0 : index
    %2 = vector.load %arg2[%c1, %c0_3] : memref<8x128xf32, #tpu.memory_space<vmem>>, vector<1x128xf32>
    %3 = tpu.iota {dimensions = array<i32: 1>} : vector<8x128xi32>
    %c32_i32 = arith.constant 32 : i32
    %4 = vector.broadcast %c32_i32 : i32 to vector<8x128xi32>
    %5 = arith.cmpi slt, %3, %4 : vector<8x128xi32>
    %cst = arith.constant 0.000000e+00 : f32
    %6 = vector.broadcast %cst : f32 to vector<8x128xf32>
    %7 = arith.select %5, %0, %6 : vector<8x128xi1>, vector<8x128xf32>
    %cst_4 = arith.constant dense<0.000000e+00> : vector<8xf32>
    %8 = vector.multi_reduction <add>, %7, %cst_4 [1] : vector<8x128xf32> to vector<8xf32>
    %9 = vector.shape_cast %8 : vector<8xf32> to vector<8x1xf32>
    %cst_5 = arith.constant 3.125000e-02 : f32
    %10 = vector.broadcast %cst_5 : f32 to vector<8x1xf32>
    %11 = arith.mulf %9, %10 : vector<8x1xf32>
    %12 = vector.broadcast %11 : vector<8x1xf32> to vector<8x128xf32>
    %13 = arith.subf %0, %12 : vector<8x128xf32>
    %cst_6 = arith.constant 0.000000e+00 : f32
    %14 = vector.broadcast %cst_6 : f32 to vector<8x128xf32>
    %15 = arith.select %5, %13, %14 : vector<8x128xi1>, vector<8x128xf32>
    %16 = arith.mulf %15, %15 : vector<8x128xf32>
    %cst_7 = arith.constant dense<0.000000e+00> : vector<8xf32>
    %17 = vector.multi_reduction <add>, %16, %cst_7 [1] : vector<8x128xf32> to vector<8xf32>
    %18 = vector.shape_cast %17 : vector<8xf32> to vector<8x1xf32>
    %cst_8 = arith.constant 0.0322580636 : f32
    %19 = vector.broadcast %cst_8 : f32 to vector<8x1xf32>
    %20 = arith.mulf %18, %19 : vector<8x1xf32>
    %21 = math.sqrt %20 : vector<8x1xf32>
    %cst_9 = arith.constant 9.99999997E-7 : f32
    %22 = vector.broadcast %cst_9 : f32 to vector<8x1xf32>
    %23 = arith.addf %21, %22 : vector<8x1xf32>
    %24 = tpu.reciprocal %23 : vector<8x1xf32> -> vector<8x1xf32>
    %25 = vector.broadcast %1 : vector<1x128xf32> to vector<8x128xf32>
    %26 = arith.mulf %25, %15 : vector<8x128xf32>
    %27 = vector.broadcast %24 : vector<8x1xf32> to vector<8x128xf32>
    %28 = arith.mulf %26, %27 : vector<8x128xf32>
    %29 = vector.broadcast %2 : vector<1x128xf32> to vector<8x128xf32>
    %30 = arith.addf %28, %29 : vector<8x128xf32>
    %31 = arith.truncf %30 : vector<8x128xf32> to vector<8x128xbf16>
    %c0_10 = arith.constant 0 : index
    %c0_11 = arith.constant 0 : index
    %32 = vector.load %arg3[%c0_10, %c0_11] : memref<128x128xbf16, #tpu.memory_space<vmem>>, vector<128x128xbf16>
    %cst_12 = arith.constant dense<0.000000e+00> : vector<8x128xf32>
    %33 = tpu.matmul %31, %32, %cst_12 {dimension_numbers = #tpu.dot_dimension_numbers<[1], [0], [0], [1], [0, 0, 1, 1], [], []>} : vector<8x128xbf16>, vector<128x128xbf16>, vector<8x128xf32> -> vector<8x128xf32>
    %34 = arith.addf %0, %33 : vector<8x128xf32>
    %c2 = arith.constant 2 : index
    %c0_13 = arith.constant 0 : index
    %35 = vector.load %arg2[%c2, %c0_13] : memref<8x128xf32, #tpu.memory_space<vmem>>, vector<1x128xf32>
    %36 = vector.broadcast %35 : vector<1x128xf32> to vector<8x128xf32>
    %37 = arith.addf %34, %36 : vector<8x128xf32>
    %c0_14 = arith.constant 0 : index
    %c0_15 = arith.constant 0 : index
    %38 = vector.load %arg4[%c0_14, %c0_15] : memref<8x128xf32, #tpu.memory_space<vmem>>, vector<8x128xf32>
    tpu.vector_store %arg4[%c0_14, %c0_15], %37 {strides = array<i32>} : memref<8x128xf32, #tpu.memory_space<vmem>>, vector<8x128xf32>,
    return
  }
  func.func @transform_0(%arg0: i32) -> (i32, i32) {
    %c0_i32 = arith.constant 0 : i32
    %c0_i32_0 = arith.constant 0 : i32
    return %arg0, %c0_i32 : i32, i32
  }
  func.func @transform_1(%arg0: i32) -> (i32, i32) {
    %c0_i32 = arith.constant 0 : i32
    %c0_i32_0 = arith.constant 0 : i32
    %c0_i32_1 = arith.constant 0 : i32
    return %c0_i32, %c0_i32_0 : i32, i32
  }
  func.func @transform_2(%arg0: i32) -> (i32, i32) {
    %c0_i32 = arith.constant 0 : i32
    %c0_i32_0 = arith.constant 0 : i32
    %c0_i32_1 = arith.constant 0 : i32
    return %c0_i32, %c0_i32_0 : i32, i32
  }
  func.func @transform_3(%arg0: i32) -> (i32, i32) {
    %c0_i32 = arith.constant 0 : i32
    %c0_i32_0 = arith.constant 0 : i32
    return %arg0, %c0_i32 : i32, i32
  }
}

module attributes {stable_mosaic.version = 11 : i64} {
  func.func @_fused_kernel(%arg0: i32, %arg1: memref<8x128xf32, #tpu.memory_space<vmem>>, %arg2: memref<8x128xf32, #tpu.memory_space<vmem>>, %arg3: memref<128x128xbf16, #tpu.memory_space<vmem>>, %arg4: memref<8x128xf32, #tpu.memory_space<vmem>>) attributes {dimension_semantics = [#tpu.dimension_semantics<parallel>], iteration_bounds = array<i64: 2>, scalar_prefetch = 0 : i64, scratch_operands = 0 : i64, tpu.core_type = #tpu.core_type<tc>, window_params = [{transform_indices = @transform_0, window_bounds = array<i64: 8, 128>}, {pipeline_mode = #tpu.pipeline_mode<synchronous>, transform_indices = @transform_1, window_bounds = array<i64: 8, 128>}, {pipeline_mode = #tpu.pipeline_mode<synchronous>, transform_indices = @transform_2, window_bounds = array<i64: 128, 128>}, {transform_indices = @transform_3, window_bounds = array<i64: 8, 128>}]} {
    %c0 = arith.constant 0 : index
    %c0_0 = arith.constant 0 : index
    %0 = vector.load %arg1[%c0, %c0_0] : memref<8x128xf32, #tpu.memory_space<vmem>>, vector<8x128xf32>
    %c0_1 = arith.constant 0 : index
    %c0_2 = arith.constant 0 : index
    %1 = vector.load %arg2[%c0_1, %c0_2] : memref<8x128xf32, #tpu.memory_space<vmem>>, vector<1x128xf32>
    %c1 = arith.constant 1 : index
    %c0_3 = arith.constant 0 : index
    %2 = vector.load %arg2[%c1, %c0_3] : memref<8x128xf32, #tpu.memory_space<vmem>>, vector<1x128xf32>
    %3 = tpu.iota {dimensions = array<i32: 1>} : vector<8x128xi32>
    %c32_i32 = arith.constant 32 : i32
    %4 = vector.broadcast %c32_i32 : i32 to vector<8x128xi32>
    %5 = arith.cmpi slt, %3, %4 : vector<8x128xi32>
    %cst = arith.constant 0.000000e+00 : f32
    %6 = vector.broadcast %cst : f32 to vector<8x128xf32>
    %7 = arith.select %5, %0, %6 : vector<8x128xi1>, vector<8x128xf32>
    %cst_4 = arith.constant dense<0.000000e+00> : vector<8xf32>
    %8 = vector.multi_reduction <add>, %7, %cst_4 [1] : vector<8x128xf32> to vector<8xf32>
    %9 = vector.shape_cast %8 : vector<8xf32> to vector<8x1xf32>
    %cst_5 = arith.constant 3.125000e-02 : f32
    %10 = vector.broadcast %cst_5 : f32 to vector<8x1xf32>
    %11 = arith.mulf %9, %10 : vector<8x1xf32>
    %12 = vector.broadcast %11 : vector<8x1xf32> to vector<8x128xf32>
    %13 = arith.subf %0, %12 : vector<8x128xf32>
    %cst_6 = arith.constant 0.000000e+00 : f32
    %14 = vector.broadcast %cst_6 : f32 to vector<8x128xf32>
    %15 = arith.select %5, %13, %14 : vector<8x128xi1>, vector<8x128xf32>
    %16 = arith.mulf %15, %15 : vector<8x128xf32>
    %cst_7 = arith.constant dense<0.000000e+00> : vector<8xf32>
    %17 = vector.multi_reduction <add>, %16, %cst_7 [1] : vector<8x128xf32> to vector<8xf32>
    %18 = vector.shape_cast %17 : vector<8xf32> to vector<8x1xf32>
    %cst_8 = arith.constant 0.0322580636 : f32
    %19 = vector.broadcast %cst_8 : f32 to vector<8x1xf32>
    %20 = arith.mulf %18, %19 : vector<8x1xf32>
    %21 = math.sqrt %20 : vector<8x1xf32>
    %cst_9 = arith.constant 9.99999997E-7 : f32
    %22 = vector.broadcast %cst_9 : f32 to vector<8x1xf32>
    %23 = arith.addf %21, %22 : vector<8x1xf32>
    %24 = tpu.reciprocal %23 : vector<8x1xf32> -> vector<8x1xf32>
    %25 = vector.broadcast %1 : vector<1x128xf32> to vector<8x128xf32>
    %26 = arith.mulf %25, %15 : vector<8x128xf32>
    %27 = vector.broadcast %24 : vector<8x1xf32> to vector<8x128xf32>
    %28 = arith.mulf %26, %27 : vector<8x128xf32>
    %29 = vector.broadcast %2 : vector<1x128xf32> to vector<8x128xf32>
    %30 = arith.addf %28, %29 : vector<8x128xf32>
    %31 = arith.truncf %30 : vector<8x128xf32> to vector<8x128xbf16>
    %c0_10 = arith.constant 0 : index
    %c0_11 = arith.constant 0 : index
    %32 = vector.load %arg3[%c0_10, %c0_11] : memref<128x128xbf16, #tpu.memory_space<vmem>>, vector<128x128xbf16>
    %cst_12 = arith.constant dense<0.000000e+00> : vector<8x128xf32>
    %33 = tpu.matmul %31, %32, %cst_12 {dimension_numbers = #tpu.dot_dimension_numbers<[1], [0], [0], [1], [0, 0, 1, 1], [], []>} : vector<8x128xbf16>, vector<128x128xbf16>, vector<8x128xf32> -> vector<8x128xf32>
    %34 = arith.addf %0, %33 : vector<8x128xf32>
    %c2 = arith.constant 2 : index
    %c0_13 = arith.constant 0 : index
    %35 = vector.load %arg2[%c2, %c0_13] : memref<8x128xf32, #tpu.memory_space<vmem>>, vector<1x128xf32>
    %36 = vector.broadcast %35 : vector<1x128xf32> to vector<8x128xf32>
    %37 = arith.addf %34, %36 : vector<8x128xf32>
    %c0_14 = arith.constant 0 : index
    %c0_15 = arith.constant 0 : index
    %38 = vector.load %arg4[%c0_14, %c0_15] : memref<8x128xf32, #tpu.memory_space<vmem>>, vector<8x128xf32>
    tpu.vector_store %arg4[%c0_14, %c0_15], %37 {strides = array<i32>} : memref<8x128xf32, #tpu.memory_space<vmem>>, vector<8x128xf32>,
    return
  }
  func.func @transform_0(%arg0: i32) -> (i32, i32) {
    %c0_i32 = arith.constant 0 : i32
    %c0_i32_0 = arith.constant 0 : i32
    return %arg0, %c0_i32 : i32, i32
  }
  func.func @transform_1(%arg0: i32) -> (i32, i32) {
    %c0_i32 = arith.constant 0 : i32
    %c0_i32_0 = arith.constant 0 : i32
    %c0_i32_1 = arith.constant 0 : i32
    return %c0_i32, %c0_i32_0 : i32, i32
  }
  func.func @transform_2(%arg0: i32) -> (i32, i32) {
    %c0_i32 = arith.constant 0 : i32
    %c0_i32_0 = arith.constant 0 : i32
    %c0_i32_1 = arith.constant 0 : i32
    return %c0_i32, %c0_i32_0 : i32, i32
  }
  func.func @transform_3(%arg0: i32) -> (i32, i32) {
    %c0_i32 = arith.constant 0 : i32
    %c0_i32_0 = arith.constant 0 : i32
    return %arg0, %c0_i32 : i32, i32
  }
}

</mosaic_0001>

<bundles_post_ra>
// kernel: tpu_custom_call.1
= control target key start
LH: loop header
LB: loop body
LE: loop exit
PB: predicated region body
PF: predicated region fallthrough
CT: control target
= control target key end

     0   :  { %8 = vsyncpa [#allocation3], 0  ;;  %s964_s0 = inlined_call_operand.hbm [shape: f32[16,128], index: 0, kind: input, shape index: {}]   ;;  %s965_s1 = inlined_call_operand.hbm [shape: f32[8,128], index: 1, kind: input, shape index: {}]   ;;  %s966_s2 = inlined_call_operand.hbm [shape: bf16[128,128], index: 2, kind: input, shape index: {}]   ;;  %s967_s3 = inlined_call_operand.hbm [shape: f32[16,128], index: 3, kind: output, shape index: {}]  }
   0x1   :  { %10 = vsyncpa [#allocation3 + $0x1], 0 }
   0x2   :  { %11 = vsyncpa [#allocation6], 0 }
   0x3   :  { %12 = vsyncpa [#allocation4], 0 }
   0x4   :  { %14 = vsyncpa [#allocation4 + $0x1], 0  ;;  %s783_s12 = smov 0   ;;  %s785_s13 = smov 0  }
   0x5   :  { %s787_s14 = smov 0   ;;  %s789_s15 = smov 0  }
   0x6 LB: > { %s804_s16 = sadd.s32 4294967295, %s753_s15   ;;  %s466_s17 = sadd.s32 4294967294, %s753_s15   ;;  %s753_s15 = sphi %s789_s15, %s989_s15   ;;  %s749_s14 = sphi %s787_s14, %s988_s14   ;;  %s745_s13 = sphi %s785_s13, %s987_s13   ;;  %s741_s12 = sphi %s783_s12, %s986_s12  }
   0x7   : > { %p40_p0 = scmp.ne.s32.totalorder %s745_s13, %s741_s12  ;;  %p968_p1 = scmp.eq.s32.totalorder %s804_s16, 0 }
   0x8   : > { %p112_p3 = scmp.eq.s32.totalorder %s466_s17, 1  ;;  %p467_p5 = scmp.ge.s32.totalorder %s753_s15, 1 }
   0x9   : > { %p813_p4 = por %p968_p1, %p40_p0  ;;  %p119_p7 = scmp.lt.s32.totalorder %s753_s15, 3 }
   0xa   : > { %p818_p6 = por %p112_p3, %p40_p0  ;;  %s755_s21 = smov [#allocation5]  }
   0xb   : > { %s972_s18 = scalar_select %p813_p4, 1, 0 }
   0xc   : > { %s973_s19 = scalar_select %p818_p6, 1, 0 }
   0xd   : > { %p823_p8 = pnand %p467_p5, %p119_p7  ;;  %s132_s22 = sshll.u32 %s755_s21, 4  ;;  %s133_s22 = int_to_ptr.vmem [resolvable:$true] %s132_s22 }
   0xe   : > { %s756_s23 = smov [#allocation7]   ;;  %s616_s26 = scalar_lea.vmem %s133_s22, 128 }
   0xf   : > { %s974_s20 = scalar_select %p823_p8, 1, 0 }
  0x10   : > { %p534_p10 = pneg %p823_p8  ;;  %s142_s24 = sshll.u32 %s756_s23, 4  ;;  %s143_s24 = int_to_ptr.vmem [resolvable:$true] %s142_s24 }
  0x11   : > { %p617_p13 = scmp.ne.s32.totalorder %s133_s22, %s616_s26  ;;  %p624_p5 = scmp.lt.s32.totalorder %s133_s22, %s133_s22 }
  0x12   : > { %p832_p11 = pnand %p534_p10, %p968_p1  ;;  %p625_p7 = scmp.lt.s32.totalorder %s616_s26, %s616_s26 }
  0x14   : > { %p607_p12 = pneg %p832_p11  ;;  %p626_p9 = por %p625_p7, %p624_p5 }
  0x16   : > { %p619_p0 = pnand %p617_p13, %p607_p12 }
  0x18   : > { %p620_p3 = pneg %p619_p0 }
  0x1a   : > { %p627_p2 = pnand %p626_p9, %p620_p3 }
  0x1c   : > { %630 = shalt.err (!%p627_p2)
}
  0x1d   : > { %537 = dma.hbm_to_vmem [thread:$0]  (!%p832_p11), %s965_s1, 128, %s133_s22, [#allocation6]  }
  0x1e   : > { %s642_s29 = scalar_lea.vmem %s143_s24, 1024  ;;  %p650_p13 = scmp.lt.s32.totalorder %s143_s24, %s143_s24 }
  0x1f   : > { %p643_p10 = scmp.ne.s32.totalorder %s143_s24, %s642_s29  ;;  %p651_p0 = scmp.lt.s32.totalorder %s642_s29, %s642_s29 }
  0x21   : > { %p645_p1 = pnand %p643_p10, %p607_p12  ;;  %p652_p4 = por %p651_p0, %p650_p13 }
  0x23   : > { %p646_p6 = pneg %p645_p1 }
  0x25   : > { %p653_p8 = pnand %p652_p4, %p646_p6 }
  0x27   : > { %656 = shalt.err (!%p653_p8)
}
  0x28   : > { %s757_s30 = smov 64   ;;  %s758_s4 = smov 4  }
  0x29   : > { %540 = dma.hbm_to_vmem [thread:$0]  (!%p832_p11), %s966_s2, 1024, %s143_s24, [#allocation6], %s757_s30, %s757_s30, %s758_s4  }
  0x2a   : > { %s855_s7 = sadd.s32 1, %s753_s15   ;;  %s27_s8 = sadd.s32 1, %s749_s14 }
  0x2b   : > { %s24_s9 = ssub.s32 %s753_s15, %s855_s7  ;;  %p34_p1 = scmp.ne.s32.totalorder %s749_s14, %s745_s13 }
  0x2c   : > { %p25_p2 = scmp.eq.s32.totalorder %s24_s9, 0  ;;  %p35_p4 = scmp.eq.s32.totalorder %s753_s15, 0 }
  0x2d   : > { %p976_p6 = scmp.eq.s32.totalorder %s804_s16, 1  ;;  %p551_p9 = scmp.lt.s32.totalorder %s753_s15, 2 }
  0x2e   : > { %s871_s11 = scalar_select %p25_p2, %s749_s14, %s27_s8  }
  0x2f   : > { %p865_p8 = por %p976_p6, %p34_p1  ;;  %p36_p12 = por %p35_p4, %p34_p1 }
  0x30   : > { %s156_s17 = sand.u32 1, %s749_s14   ;;  %s472_s22 = sshll.u32 %s753_s15, 7 }
  0x31   : > { %s977_s10 = scalar_select %p865_p8, 1, 0 }
  0x32   : > { %s471_s21 = sshll.u32 %s156_s17, 3  ;;  %s878_s25 = scalar_lea.hbm %s964_s0, %s472_s22 }
  0x33   : > { %s160_s26 = scalar_lea.vmem [#allocation2], %s471_s21  ;;  %p880_p11 = pnand %p551_p9, %p36_p12 }
  0x34   : > { %s167_s27 = sshll.u32 %s160_s26, 4  ;;  %s157_s29 = scalar_lea.sflag [#allocation3], %s156_s17  ;;  %s168_s27 = int_to_ptr.vmem [resolvable:$true] %s167_s27 }
  0x35   : > { %s657_s30 = scalar_lea.hbm %s878_s25, 128  ;;  %p659_p5 = pneg %p880_p11 }
  0x36   : > { %p658_p3 = scmp.ne.s32.totalorder %s878_s25, %s657_s30  ;;  %s662_s6 = scalar_lea.hbm %s964_s0, 256 }
  0x37   : > { %p663_p13 = scmp.lt.s32.totalorder %s878_s25, %s964_s0  ;;  %p664_p0 = scmp.lt.s32.totalorder %s662_s6, %s657_s30 }
  0x38   : > { %p660_p7 = pnand %p659_p5, %p658_p3 }
  0x39   : > { %p665_p1 = por %p664_p0, %p663_p13 }
  0x3a   : > { %p661_p10 = pneg %p660_p7 }
  0x3c   : > { %p666_p2 = pnand %p665_p1, %p661_p10 }
  0x3e   : > { %669 = shalt.err (!%p666_p2)
}
  0x3f   : > { %s670_s21 = scalar_lea.vmem %s168_s27, 128  ;;  %s759_s17 = smov [#allocation2]  }
  0x40   : > { %p671_p4 = scmp.ne.s32.totalorder %s168_s27, %s670_s21  ;;  %s675_s22 = sshll.u32 %s759_s17, 4  ;;  %s676_s22 = int_to_ptr.vmem [resolvable:$false] %s675_s22 }
  0x41   : > { %s677_s23 = scalar_lea.vmem %s676_s22, 256  ;;  %p678_p12 = scmp.lt.s32.totalorder %s168_s27, %s676_s22 }
  0x42   : > { %p673_p6 = pnand %p671_p4, %p659_p5  ;;  %p679_p3 = scmp.lt.s32.totalorder %s677_s23, %s670_s21 }
  0x44   : > { %p674_p9 = pneg %p673_p6  ;;  %p680_p7 = por %p679_p3, %p678_p12 }
  0x46   : > { %p681_p8 = pnand %p680_p7, %p674_p9 }
  0x48   : > { %684 = shalt.err (!%p681_p8)
}
  0x49   : > { %544 = dma.hbm_to_vmem [thread:$0]  (!%p880_p11), %s878_s25, 128, %s168_s27, %s157_s29  }
  0x4a   : > { %p979_p10 = scmp.ne.s32.totalorder %s974_s20, 0 }
  0x4b   : > { %s901_s24 = sand.u32 (!%p979_p10), 1, %s745_s13   ;;  %p980_p5 = scmp.ne.s32.totalorder (!%p979_p10), %s972_s18, 0 }
  0x4c   : > { %176 = sbr.rel (%p979_p10) target bundleno = 627 (0x273), region = 32  ;;  %s474_s26 = sshll.u32 (!%p979_p10), %s901_s24, 3 }
  0x4d   : > { %s179_s30 = scalar_lea.sflag (!%p979_p10), [#allocation3], %s901_s24  ;;  %s182_s4 = scalar_lea.vmem (!%p979_p10), [#allocation2], %s474_s26 }
  0x51   : > { %728 = dma.done.wait (%p980_p5), %s179_s30, 128  }
  0x52   : > { %730 = vsyncadd (%p980_p5), %s179_s30, 4294967168  ;;  %p981_p8 = scmp.eq.s32.totalorder %s804_s16, 0 }
  0x54   : > { %732 = dma.done.wait (%p981_p8), [#allocation6], 1152   ;;  %p982_p11 = pmov %p981_p8 }
  0x55   : > { %v217_v0 = vlaneseq  ;;  %v214_v2 = vld [vmem:[%s182_s4] sm:$0xff]  ;;  %v593_v9 = vld [vmem:[#allocation7 + $0x38] sm:$0xff]   ;;  %v760_v10 = vmov 0.0   ;;  %v596_v13 = vld [vmem:[#allocation7 + $0x20] sm:$0xff]   ;;  %vm761_vm1 = vmmov 0   ;;  %s490_s18 = sshll.u32 %s804_s16, 7 }
  0x56   : > { %734 = vsyncadd (%p982_p11), [#allocation6], 4294966144  ;;  %502 = vmatprep.subr.bf16.mxu0 %v760_v10  ;;  %v594_v11 = vld [vmem:[#allocation7 + $0x30] sm:$0xff]   ;;  %v595_v12 = vld [vmem:[#allocation7 + $0x28] sm:$0xff]   ;;  %518 = vmatprep.mubr.msk.bf16.mxu0 %vm761_vm1, %v760_v10  ;;  %s212_s20 = scalar_lea.vmem [#allocation8], %s474_s26  ;;  %s921_s29 = scalar_lea.hbm %s967_s3, %s490_s18 }
  0x57   : > { %v218_v1 = vand.u32 127, %v217_v0  ;;  %503 = vmatpush3.bf16.msra.mxu0 %v593_v9  ;;  %v597_v14 = vld [vmem:[#allocation7 + $0x18] sm:$0xff]   ;;  %v598_v15 = vld [vmem:[#allocation7 + $0x10] sm:$0xff]   ;;  %v599_v16 = vld [vmem:[#allocation7 + $0x8] sm:$0xff]   ;;  %s377_s25 = sshll.u32 %s212_s20, 4  ;;  %s364_s16 = scalar_lea.sflag [#allocation4], %s901_s24  ;;  %s923_s25 = int_to_ptr.vmem [resolvable:$true] %s377_s25 }
  0x58   : > { %504 = vmatprep.subr.bf16.mxu0 %v760_v10  ;;  %v600_v17 = vld [vmem:[#allocation7] sm:$0xff]   ;;  %v478_v26 = vld [vmem:[#allocation5] ss:$0 sm:$0xff]  ;;  %v479_v29 = vld [vmem:[#allocation5 + $0x1] ss:$0 sm:$0xff]  ;;  %s685_s5 = scalar_lea.vmem %s923_s25, 128 }
  0x59   : > { %vm219_vm0 = vcmp.lt.s32.totalorder %v218_v1, 32  ;;  %v488_v34 = vld [vmem:[#allocation5 + $0x2] ss:$0 sm:$0xff]  ;;  %p686_p13 = scmp.ne.s32.totalorder %s923_s25, %s685_s5  ;;  %p983_p0 = scmp.ne.s32.totalorder %s977_s10, 0 }
  0x5a   : > { %v220_v3 = vsel %vm219_vm0, %v214_v2, 0.0  ;;  %s762_s6 = smov [#allocation8]  }
  0x5b   : > { %221 = vadd.xlane.f32.xlu0 %v220_v3  ;;  %505 = vmatpush3.bf16.msra.mxu0 %v594_v11  ;;  %p687_p1 = pnand %p686_p13, %p983_p0  ;;  %s689_s8 = sshll.u32 %s762_s6, 4  ;;  %s690_s8 = int_to_ptr.vmem [resolvable:$false] %s689_s8 }
  0x5c   : > { %506 = vmatprep.subr.bf16.mxu0 %v760_v10  ;;  %s691_s9 = scalar_lea.vmem %s690_s8, 256  ;;  %p692_p4 = scmp.lt.s32.totalorder %s923_s25, %s690_s8 }
  0x5d   : > { %p688_p2 = pneg %p687_p1  ;;  %p693_p6 = scmp.lt.s32.totalorder %s691_s9, %s685_s5 }
  0x5f   : > { %507 = vmatpush3.bf16.msra.mxu0 %v595_v12  ;;  %p694_p9 = por %p693_p6, %p692_p4 }
  0x60   : > { %508 = vmatprep.subr.bf16.mxu0 %v760_v10 }
  0x61   : > { %p695_p12 = pnand %p694_p9, %p688_p2 }
  0x63   : > { %509 = vmatpush3.bf16.msra.mxu0 %v596_v13 }
  0x64   : > { %510 = vmatprep.subr.bf16.mxu0 %v760_v10 }
  0x67   : > { %511 = vmatpush3.bf16.msra.mxu0 %v597_v14 }
  0x68   : > { %512 = vmatprep.subr.bf16.mxu0 %v760_v10 }
  0x6b   : > { %513 = vmatpush3.bf16.msra.mxu0 %v598_v15 }
  0x6c   : > { %514 = vmatprep.subr.bf16.mxu0 %v760_v10 }
  0x6f   : > { %515 = vmatpush3.bf16.msra.mxu0 %v599_v16 }
  0x70   : > { %516 = vmatprep.subr.bf16.mxu0 %v760_v10 }
  0x73   : > { %517 = vmatpush3.bf16.msra.mxu0 %v600_v17 }
  0xe4   : > { %v222_v4 = vpop.xlane.xlu0 %221 }
  0xe5   : > { %v223_v5 = vmul.f32 0.03125, %v222_v4 }
  0xe7   : > { %v224_v6 = vsub.f32 %v214_v2, %v223_v5 }
  0xe9   : > { %v225_v7 = vsel %vm219_vm0, %v224_v6, 0.0 }
  0xea   : > { %v226_v8 = vmul.f32 %v225_v7, %v225_v7  ;;  %v243_v27 = vmul.f32 %v478_v26, %v225_v7 }
  0xec   : > { %227 = vadd.xlane.f32.xlu0 %v226_v8 }
 0x175   : > { %v228_v18 = vpop.xlane.xlu0 %227 }
 0x176   : > { %v229_v19 = vmul.f32 0.032258064, %v228_v18 }
 0x178   : > { %601 = vrsqrt.f32 %v229_v19  ;;  %vm232_vm2 = vcmp.eq.f32.partialorder %v229_v19, inf  ;;  %v235_v22 = vand.u32 2147483648, %v229_v19  ;;  %vm234_vm3 = vcmp.eq.f32.partialorder %v229_v19, 0.0 }
 0x185   : > { %v602_v20 = vpop.eup %601 }
 0x186   : > { %v231_v21 = vmul.f32 %v602_v20, %v229_v19 }
 0x188   : > { %v233_v23 = vsel %vm232_vm2, %v229_v19, %v231_v21 }
 0x189   : > { %v236_v24 = vsel %vm234_vm3, %v235_v22, %v233_v23 }
 0x18a   : > { %v237_v25 = vadd.f32 1e-06, %v236_v24 }
 0x18c   : > { %603 = vrcp.f32 %v237_v25 }
 0x199   : > { %v604_v28 = vpop.eup %603 }
 0x19a   : > { %v244_v30 = vmul.f32 %v604_v28, %v243_v27 }
 0x19c   : > { %v249_v31 = vadd.f32 %v479_v29, %v244_v30 }
 0x19e   : > { %v250_v32 = vpack.c.bf16 %v249_v31, %v249_v31 }
 0x1a0   : > { %519 = vmatmul.mubr.bf16.vlgmr.msra.gmra.mxu0 %v250_v32 }
 0x260   : > { %v349_v33 = vpop.f32.mrf.mxu0 }
 0x261   : > { %v355_v35 = vadd.f32 %v349_v33, %v214_v2 }
 0x262   : > { %v520_v36 = vpop.f32.mrf.mxu0 }
 0x263   : > { %v361_v37 = vadd.f32 %v488_v34, %v355_v35 }
 0x264   : > { %v352_v38 = vpop.f32.mrf.mxu0 }
 0x265   : > { %362 = vst [vmem:[%s212_s20] sm:$0xff] %v361_v37 }
 0x266   : > { %v521_v39 = vpop.f32.mrf.mxu0 }
 0x267   : > { %698 = shalt.err (!%p695_p12)
}
 0x268   : > { %s699_s21 = scalar_lea.hbm %s921_s29, 128  ;;  %s703_s23 = scalar_lea.hbm %s967_s3, 256 }
 0x269   : > { %p700_p3 = scmp.ne.s32.totalorder %s921_s29, %s699_s21  ;;  %p704_p5 = scmp.lt.s32.totalorder %s921_s29, %s967_s3 }
 0x26a   : > { %p705_p8 = scmp.lt.s32.totalorder %s703_s23, %s699_s21 }
 0x26b   : > { %p701_p7 = pnand %p700_p3, %p983_p0 }
 0x26c   : > { %p706_p11 = por %p705_p8, %p704_p5 }
 0x26d   : > { %p702_p10 = pneg %p701_p7 }
 0x26f   : > { %p707_p13 = pnand %p706_p11, %p702_p10 }
 0x271   : > { %710 = shalt.err (!%p707_p13)
}
 0x272   : > { %532 = dma.vmem_to_hbm [thread:$0]  (%p983_p0), %s923_s25, 128, %s921_s29, %s364_s16  }
 0x273 PF: > { %s389_s30 = sand.u32 1, %s741_s12   ;;  %p984_p1 = scmp.ne.s32.totalorder %s973_s19, 0 }
 0x274   : > { %p985_p2 = scmp.ge.s32.totalorder %s753_s15, 2  ;;  %s390_s4 = scalar_lea.sflag [#allocation4], %s389_s30 }
 0x276   : > { %p546_p4 = pnand %p985_p2, %p984_p1 }
 0x278   : > { %p547_p6 = pneg %p546_p4 }
 0x27a   : > { %736 = dma.done.wait (%p547_p6), %s390_s4, 128  }
 0x27b   : > { %738 = vsyncadd (%p547_p6), %s390_s4, 4294967168  ;;  %p17_p9 = scmp.ge.s32.totalorder %s855_s7, 4   ;;  %s986_s12 = smov %s745_s13 }
 0x27c   : > { %s987_s13 = smov %s749_s14  ;;  %s988_s14 = smov %s871_s11 }
 0x27d   : > { %s989_s15 = smov %s855_s7  ;;  %19 = sbr.rel (!%p17_p9) target bundleno = 6 (0x6), region = 85 }
 0x282   :  { %395 = vsyncpa [#allocation3], 1 }
 0x283   :  { %397 = vsyncpa [#allocation3 + $0x1], 1 }
 0x284   :  { %398 = vsyncpa [#allocation6], 1 }
 0x285   :  { %399 = vsyncpa [#allocation4], 1 }
 0x286   :  { %401 = vsyncpa [#allocation4 + $0x1], 1 }

// kernel: tpu_custom_call.1
= control target key start
LH: loop header
LB: loop body
LE: loop exit
PB: predicated region body
PF: predicated region fallthrough
CT: control target
= control target key end

     0   :  { %8 = vsyncpa [#allocation3], 0  ;;  %s964_s0 = inlined_call_operand.hbm [shape: f32[16,128], index: 0, kind: input, shape index: {}]   ;;  %s965_s1 = inlined_call_operand.hbm [shape: f32[8,128], index: 1, kind: input, shape index: {}]   ;;  %s966_s2 = inlined_call_operand.hbm [shape: bf16[128,128], index: 2, kind: input, shape index: {}]   ;;  %s967_s3 = inlined_call_operand.hbm [shape: f32[16,128], index: 3, kind: output, shape index: {}]  }
   0x1   :  { %10 = vsyncpa [#allocation3 + $0x1], 0 }
   0x2   :  { %11 = vsyncpa [#allocation6], 0 }
   0x3   :  { %12 = vsyncpa [#allocation4], 0 }
   0x4   :  { %14 = vsyncpa [#allocation4 + $0x1], 0  ;;  %s783_s12 = smov 0   ;;  %s785_s13 = smov 0  }
   0x5   :  { %s787_s14 = smov 0   ;;  %s789_s15 = smov 0  }
   0x6 LB: > { %s804_s16 = sadd.s32 4294967295, %s753_s15   ;;  %s466_s17 = sadd.s32 4294967294, %s753_s15   ;;  %s753_s15 = sphi %s789_s15, %s989_s15   ;;  %s749_s14 = sphi %s787_s14, %s988_s14   ;;  %s745_s13 = sphi %s785_s13, %s987_s13   ;;  %s741_s12 = sphi %s783_s12, %s986_s12  }
   0x7   : > { %p40_p0 = scmp.ne.s32.totalorder %s745_s13, %s741_s12  ;;  %p968_p1 = scmp.eq.s32.totalorder %s804_s16, 0 }
   0x8   : > { %p112_p3 = scmp.eq.s32.totalorder %s466_s17, 1  ;;  %p467_p5 = scmp.ge.s32.totalorder %s753_s15, 1 }
   0x9   : > { %p813_p4 = por %p968_p1, %p40_p0  ;;  %p119_p7 = scmp.lt.s32.totalorder %s753_s15, 3 }
   0xa   : > { %p818_p6 = por %p112_p3, %p40_p0  ;;  %s755_s21 = smov [#allocation5]  }
   0xb   : > { %s972_s18 = scalar_select %p813_p4, 1, 0 }
   0xc   : > { %s973_s19 = scalar_select %p818_p6, 1, 0 }
   0xd   : > { %p823_p8 = pnand %p467_p5, %p119_p7  ;;  %s132_s22 = sshll.u32 %s755_s21, 4  ;;  %s133_s22 = int_to_ptr.vmem [resolvable:$true] %s132_s22 }
   0xe   : > { %s756_s23 = smov [#allocation7]   ;;  %s616_s26 = scalar_lea.vmem %s133_s22, 128 }
   0xf   : > { %s974_s20 = scalar_select %p823_p8, 1, 0 }
  0x10   : > { %p534_p10 = pneg %p823_p8  ;;  %s142_s24 = sshll.u32 %s756_s23, 4  ;;  %s143_s24 = int_to_ptr.vmem [resolvable:$true] %s142_s24 }
  0x11   : > { %p617_p13 = scmp.ne.s32.totalorder %s133_s22, %s616_s26  ;;  %p624_p5 = scmp.lt.s32.totalorder %s133_s22, %s133_s22 }
  0x12   : > { %p832_p11 = pnand %p534_p10, %p968_p1  ;;  %p625_p7 = scmp.lt.s32.totalorder %s616_s26, %s616_s26 }
  0x14   : > { %p607_p12 = pneg %p832_p11  ;;  %p626_p9 = por %p625_p7, %p624_p5 }
  0x16   : > { %p619_p0 = pnand %p617_p13, %p607_p12 }
  0x18   : > { %p620_p3 = pneg %p619_p0 }
  0x1a   : > { %p627_p2 = pnand %p626_p9, %p620_p3 }
  0x1c   : > { %630 = shalt.err (!%p627_p2)
}
  0x1d   : > { %537 = dma.hbm_to_vmem [thread:$0]  (!%p832_p11), %s965_s1, 128, %s133_s22, [#allocation6]  }
  0x1e   : > { %s642_s29 = scalar_lea.vmem %s143_s24, 1024  ;;  %p650_p13 = scmp.lt.s32.totalorder %s143_s24, %s143_s24 }
  0x1f   : > { %p643_p10 = scmp.ne.s32.totalorder %s143_s24, %s642_s29  ;;  %p651_p0 = scmp.lt.s32.totalorder %s642_s29, %s642_s29 }
  0x21   : > { %p645_p1 = pnand %p643_p10, %p607_p12  ;;  %p652_p4 = por %p651_p0, %p650_p13 }
  0x23   : > { %p646_p6 = pneg %p645_p1 }
  0x25   : > { %p653_p8 = pnand %p652_p4, %p646_p6 }
  0x27   : > { %656 = shalt.err (!%p653_p8)
}
  0x28   : > { %s757_s30 = smov 64   ;;  %s758_s4 = smov 4  }
  0x29   : > { %540 = dma.hbm_to_vmem [thread:$0]  (!%p832_p11), %s966_s2, 1024, %s143_s24, [#allocation6], %s757_s30, %s757_s30, %s758_s4  }
  0x2a   : > { %s855_s7 = sadd.s32 1, %s753_s15   ;;  %s27_s8 = sadd.s32 1, %s749_s14 }
  0x2b   : > { %s24_s9 = ssub.s32 %s753_s15, %s855_s7  ;;  %p34_p1 = scmp.ne.s32.totalorder %s749_s14, %s745_s13 }
  0x2c   : > { %p25_p2 = scmp.eq.s32.totalorder %s24_s9, 0  ;;  %p35_p4 = scmp.eq.s32.totalorder %s753_s15, 0 }
  0x2d   : > { %p976_p6 = scmp.eq.s32.totalorder %s804_s16, 1  ;;  %p551_p9 = scmp.lt.s32.totalorder %s753_s15, 2 }
  0x2e   : > { %s871_s11 = scalar_select %p25_p2, %s749_s14, %s27_s8  }
  0x2f   : > { %p865_p8 = por %p976_p6, %p34_p1  ;;  %p36_p12 = por %p35_p4, %p34_p1 }
  0x30   : > { %s156_s17 = sand.u32 1, %s749_s14   ;;  %s472_s22 = sshll.u32 %s753_s15, 7 }
  0x31   : > { %s977_s10 = scalar_select %p865_p8, 1, 0 }
  0x32   : > { %s471_s21 = sshll.u32 %s156_s17, 3  ;;  %s878_s25 = scalar_lea.hbm %s964_s0, %s472_s22 }
  0x33   : > { %s160_s26 = scalar_lea.vmem [#allocation2], %s471_s21  ;;  %p880_p11 = pnand %p551_p9, %p36_p12 }
  0x34   : > { %s167_s27 = sshll.u32 %s160_s26, 4  ;;  %s157_s29 = scalar_lea.sflag [#allocation3], %s156_s17  ;;  %s168_s27 = int_to_ptr.vmem [resolvable:$true] %s167_s27 }
  0x35   : > { %s657_s30 = scalar_lea.hbm %s878_s25, 128  ;;  %p659_p5 = pneg %p880_p11 }
  0x36   : > { %p658_p3 = scmp.ne.s32.totalorder %s878_s25, %s657_s30  ;;  %s662_s6 = scalar_lea.hbm %s964_s0, 256 }
  0x37   : > { %p663_p13 = scmp.lt.s32.totalorder %s878_s25, %s964_s0  ;;  %p664_p0 = scmp.lt.s32.totalorder %s662_s6, %s657_s30 }
  0x38   : > { %p660_p7 = pnand %p659_p5, %p658_p3 }
  0x39   : > { %p665_p1 = por %p664_p0, %p663_p13 }
  0x3a   : > { %p661_p10 = pneg %p660_p7 }
  0x3c   : > { %p666_p2 = pnand %p665_p1, %p661_p10 }
  0x3e   : > { %669 = shalt.err (!%p666_p2)
}
  0x3f   : > { %s670_s21 = scalar_lea.vmem %s168_s27, 128  ;;  %s759_s17 = smov [#allocation2]  }
  0x40   : > { %p671_p4 = scmp.ne.s32.totalorder %s168_s27, %s670_s21  ;;  %s675_s22 = sshll.u32 %s759_s17, 4  ;;  %s676_s22 = int_to_ptr.vmem [resolvable:$false] %s675_s22 }
  0x41   : > { %s677_s23 = scalar_lea.vmem %s676_s22, 256  ;;  %p678_p12 = scmp.lt.s32.totalorder %s168_s27, %s676_s22 }
  0x42   : > { %p673_p6 = pnand %p671_p4, %p659_p5  ;;  %p679_p3 = scmp.lt.s32.totalorder %s677_s23, %s670_s21 }
  0x44   : > { %p674_p9 = pneg %p673_p6  ;;  %p680_p7 = por %p679_p3, %p678_p12 }
  0x46   : > { %p681_p8 = pnand %p680_p7, %p674_p9 }
  0x48   : > { %684 = shalt.err (!%p681_p8)
}
  0x49   : > { %544 = dma.hbm_to_vmem [thread:$0]  (!%p880_p11), %s878_s25, 128, %s168_s27, %s157_s29  }
  0x4a   : > { %p979_p10 = scmp.ne.s32.totalorder %s974_s20, 0 }
  0x4b   : > { %s901_s24 = sand.u32 (!%p979_p10), 1, %s745_s13   ;;  %p980_p5 = scmp.ne.s32.totalorder (!%p979_p10), %s972_s18, 0 }
  0x4c   : > { %176 = sbr.rel (%p979_p10) target bundleno = 627 (0x273), region = 32  ;;  %s474_s26 = sshll.u32 (!%p979_p10), %s901_s24, 3 }
  0x4d   : > { %s179_s30 = scalar_lea.sflag (!%p979_p10), [#allocation3], %s901_s24  ;;  %s182_s4 = scalar_lea.vmem (!%p979_p10), [#allocation2], %s474_s26 }
  0x51   : > { %728 = dma.done.wait (%p980_p5), %s179_s30, 128  }
  0x52   : > { %730 = vsyncadd (%p980_p5), %s179_s30, 4294967168  ;;  %p981_p8 = scmp.eq.s32.totalorder %s804_s16, 0 }
  0x54   : > { %732 = dma.done.wait (%p981_p8), [#allocation6], 1152   ;;  %p982_p11 = pmov %p981_p8 }
  0x55   : > { %v217_v0 = vlaneseq  ;;  %v214_v2 = vld [vmem:[%s182_s4] sm:$0xff]  ;;  %v593_v9 = vld [vmem:[#allocation7 + $0x38] sm:$0xff]   ;;  %v760_v10 = vmov 0.0   ;;  %v596_v13 = vld [vmem:[#allocation7 + $0x20] sm:$0xff]   ;;  %vm761_vm1 = vmmov 0   ;;  %s490_s18 = sshll.u32 %s804_s16, 7 }
  0x56   : > { %734 = vsyncadd (%p982_p11), [#allocation6], 4294966144  ;;  %502 = vmatprep.subr.bf16.mxu0 %v760_v10  ;;  %v594_v11 = vld [vmem:[#allocation7 + $0x30] sm:$0xff]   ;;  %v595_v12 = vld [vmem:[#allocation7 + $0x28] sm:$0xff]   ;;  %518 = vmatprep.mubr.msk.bf16.mxu0 %vm761_vm1, %v760_v10  ;;  %s212_s20 = scalar_lea.vmem [#allocation8], %s474_s26  ;;  %s921_s29 = scalar_lea.hbm %s967_s3, %s490_s18 }
  0x57   : > { %v218_v1 = vand.u32 127, %v217_v0  ;;  %503 = vmatpush3.bf16.msra.mxu0 %v593_v9  ;;  %v597_v14 = vld [vmem:[#allocation7 + $0x18] sm:$0xff]   ;;  %v598_v15 = vld [vmem:[#allocation7 + $0x10] sm:$0xff]   ;;  %v599_v16 = vld [vmem:[#allocation7 + $0x8] sm:$0xff]   ;;  %s377_s25 = sshll.u32 %s212_s20, 4  ;;  %s364_s16 = scalar_lea.sflag [#allocation4], %s901_s24  ;;  %s923_s25 = int_to_ptr.vmem [resolvable:$true] %s377_s25 }
  0x58   : > { %504 = vmatprep.subr.bf16.mxu0 %v760_v10  ;;  %v600_v17 = vld [vmem:[#allocation7] sm:$0xff]   ;;  %v478_v26 = vld [vmem:[#allocation5] ss:$0 sm:$0xff]  ;;  %v479_v29 = vld [vmem:[#allocation5 + $0x1] ss:$0 sm:$0xff]  ;;  %s685_s5 = scalar_lea.vmem %s923_s25, 128 }
  0x59   : > { %vm219_vm0 = vcmp.lt.s32.totalorder %v218_v1, 32  ;;  %v488_v34 = vld [vmem:[#allocation5 + $0x2] ss:$0 sm:$0xff]  ;;  %p686_p13 = scmp.ne.s32.totalorder %s923_s25, %s685_s5  ;;  %p983_p0 = scmp.ne.s32.totalorder %s977_s10, 0 }
  0x5a   : > { %v220_v3 = vsel %vm219_vm0, %v214_v2, 0.0  ;;  %s762_s6 = smov [#allocation8]  }
  0x5b   : > { %221 = vadd.xlane.f32.xlu0 %v220_v3  ;;  %505 = vmatpush3.bf16.msra.mxu0 %v594_v11  ;;  %p687_p1 = pnand %p686_p13, %p983_p0  ;;  %s689_s8 = sshll.u32 %s762_s6, 4  ;;  %s690_s8 = int_to_ptr.vmem [resolvable:$false] %s689_s8 }
  0x5c   : > { %506 = vmatprep.subr.bf16.mxu0 %v760_v10  ;;  %s691_s9 = scalar_lea.vmem %s690_s8, 256  ;;  %p692_p4 = scmp.lt.s32.totalorder %s923_s25, %s690_s8 }
  0x5d   : > { %p688_p2 = pneg %p687_p1  ;;  %p693_p6 = scmp.lt.s32.totalorder %s691_s9, %s685_s5 }
  0x5f   : > { %507 = vmatpush3.bf16.msra.mxu0 %v595_v12  ;;  %p694_p9 = por %p693_p6, %p692_p4 }
  0x60   : > { %508 = vmatprep.subr.bf16.mxu0 %v760_v10 }
  0x61   : > { %p695_p12 = pnand %p694_p9, %p688_p2 }
  0x63   : > { %509 = vmatpush3.bf16.msra.mxu0 %v596_v13 }
  0x64   : > { %510 = vmatprep.subr.bf16.mxu0 %v760_v10 }
  0x67   : > { %511 = vmatpush3.bf16.msra.mxu0 %v597_v14 }
  0x68   : > { %512 = vmatprep.subr.bf16.mxu0 %v760_v10 }
  0x6b   : > { %513 = vmatpush3.bf16.msra.mxu0 %v598_v15 }
  0x6c   : > { %514 = vmatprep.subr.bf16.mxu0 %v760_v10 }
  0x6f   : > { %515 = vmatpush3.bf16.msra.mxu0 %v599_v16 }
  0x70   : > { %516 = vmatprep.subr.bf16.mxu0 %v760_v10 }
  0x73   : > { %517 = vmatpush3.bf16.msra.mxu0 %v600_v17 }
  0xe4   : > { %v222_v4 = vpop.xlane.xlu0 %221 }
  0xe5   : > { %v223_v5 = vmul.f32 0.03125, %v222_v4 }
  0xe7   : > { %v224_v6 = vsub.f32 %v214_v2, %v223_v5 }
  0xe9   : > { %v225_v7 = vsel %vm219_vm0, %v224_v6, 0.0 }
  0xea   : > { %v226_v8 = vmul.f32 %v225_v7, %v225_v7  ;;  %v243_v27 = vmul.f32 %v478_v26, %v225_v7 }
  0xec   : > { %227 = vadd.xlane.f32.xlu0 %v226_v8 }
 0x175   : > { %v228_v18 = vpop.xlane.xlu0 %227 }
 0x176   : > { %v229_v19 = vmul.f32 0.032258064, %v228_v18 }
 0x178   : > { %601 = vrsqrt.f32 %v229_v19  ;;  %vm232_vm2 = vcmp.eq.f32.partialorder %v229_v19, inf  ;;  %v235_v22 = vand.u32 2147483648, %v229_v19  ;;  %vm234_vm3 = vcmp.eq.f32.partialorder %v229_v19, 0.0 }
 0x185   : > { %v602_v20 = vpop.eup %601 }
 0x186   : > { %v231_v21 = vmul.f32 %v602_v20, %v229_v19 }
 0x188   : > { %v233_v23 = vsel %vm232_vm2, %v229_v19, %v231_v21 }
 0x189   : > { %v236_v24 = vsel %vm234_vm3, %v235_v22, %v233_v23 }
 0x18a   : > { %v237_v25 = vadd.f32 1e-06, %v236_v24 }
 0x18c   : > { %603 = vrcp.f32 %v237_v25 }
 0x199   : > { %v604_v28 = vpop.eup %603 }
 0x19a   : > { %v244_v30 = vmul.f32 %v604_v28, %v243_v27 }
 0x19c   : > { %v249_v31 = vadd.f32 %v479_v29, %v244_v30 }
 0x19e   : > { %v250_v32 = vpack.c.bf16 %v249_v31, %v249_v31 }
 0x1a0   : > { %519 = vmatmul.mubr.bf16.vlgmr.msra.gmra.mxu0 %v250_v32 }
 0x260   : > { %v349_v33 = vpop.f32.mrf.mxu0 }
 0x261   : > { %v355_v35 = vadd.f32 %v349_v33, %v214_v2 }
 0x262   : > { %v520_v36 = vpop.f32.mrf.mxu0 }
 0x263   : > { %v361_v37 = vadd.f32 %v488_v34, %v355_v35 }
 0x264   : > { %v352_v38 = vpop.f32.mrf.mxu0 }
 0x265   : > { %362 = vst [vmem:[%s212_s20] sm:$0xff] %v361_v37 }
 0x266   : > { %v521_v39 = vpop.f32.mrf.mxu0 }
 0x267   : > { %698 = shalt.err (!%p695_p12)
}
 0x268   : > { %s699_s21 = scalar_lea.hbm %s921_s29, 128  ;;  %s703_s23 = scalar_lea.hbm %s967_s3, 256 }
 0x269   : > { %p700_p3 = scmp.ne.s32.totalorder %s921_s29, %s699_s21  ;;  %p704_p5 = scmp.lt.s32.totalorder %s921_s29, %s967_s3 }
 0x26a   : > { %p705_p8 = scmp.lt.s32.totalorder %s703_s23, %s699_s21 }
 0x26b   : > { %p701_p7 = pnand %p700_p3, %p983_p0 }
 0x26c   : > { %p706_p11 = por %p705_p8, %p704_p5 }
 0x26d   : > { %p702_p10 = pneg %p701_p7 }
 0x26f   : > { %p707_p13 = pnand %p706_p11, %p702_p10 }
 0x271   : > { %710 = shalt.err (!%p707_p13)
}
 0x272   : > { %532 = dma.vmem_to_hbm [thread:$0]  (%p983_p0), %s923_s25, 128, %s921_s29, %s364_s16  }
 0x273 PF: > { %s389_s30 = sand.u32 1, %s741_s12   ;;  %p984_p1 = scmp.ne.s32.totalorder %s973_s19, 0 }
 0x274   : > { %p985_p2 = scmp.ge.s32.totalorder %s753_s15, 2  ;;  %s390_s4 = scalar_lea.sflag [#allocation4], %s389_s30 }
 0x276   : > { %p546_p4 = pnand %p985_p2, %p984_p1 }
 0x278   : > { %p547_p6 = pneg %p546_p4 }
 0x27a   : > { %736 = dma.done.wait (%p547_p6), %s390_s4, 128  }
 0x27b   : > { %738 = vsyncadd (%p547_p6), %s390_s4, 4294967168  ;;  %p17_p9 = scmp.ge.s32.totalorder %s855_s7, 4   ;;  %s986_s12 = smov %s745_s13 }
 0x27c   : > { %s987_s13 = smov %s749_s14  ;;  %s988_s14 = smov %s871_s11 }
 0x27d   : > { %s989_s15 = smov %s855_s7  ;;  %19 = sbr.rel (!%p17_p9) target bundleno = 6 (0x6), region = 85 }
 0x282   :  { %395 = vsyncpa [#allocation3], 1 }
 0x283   :  { %397 = vsyncpa [#allocation3 + $0x1], 1 }
 0x284   :  { %398 = vsyncpa [#allocation6], 1 }
 0x285   :  { %399 = vsyncpa [#allocation4], 1 }
 0x286   :  { %401 = vsyncpa [#allocation4 + $0x1], 1 }

</bundles_post_ra>
